<compile_context>
chip_gen: v7x
topology: tpu7x:2x2x1
jax: 0.10.0
libtpu: 0.0.40
codegen_flags: <defaults>
</compile_context>

<pallas_src>
import jax
import jax.numpy as jnp
from jax.experimental import pallas as pl
from jax.experimental.pallas import tpu as pltpu


def _round_up(n, m):
    return ((n + m - 1) // m) * m


def make_kernel(idx_c, idx_d, idx_f, idx_g, idx_h):
    """Returns a Pallas kernel body with the (static) switch indices baked in."""

    def kernel(x_ref, e1_ref, w1_ref, scal_ref, out_ref):
        # x_ref:    (D, TB) f32  VMEM   (batch on lanes, features on sublanes)
        # e1_ref:   (D, 1)  f32  VMEM   (PowerActivation1 exponents, resident)
        # w1_ref:   (D, 1)  f32  VMEM   (linear1 weight, resident)
        # scal_ref: (7,)    f32  SMEM   [b1, e2, w2, b2, e3, w3, b3]
        # out_ref:  (1, TB) f32  VMEM   (lane-dense output tile)
        x = x_ref[...]
        e1 = e1_ref[...]
        w1 = w1_ref[...]

        b1 = scal_ref[0]
        e2 = scal_ref[1]
        w2 = scal_ref[2]
        b2 = scal_ref[3]
        e3 = scal_ref[4]
        w3 = scal_ref[5]
        b3 = scal_ref[6]

        def log_power1():
            # log(prod_j x_j**e1_j) = sum_j e1_j * log(x_j)   -> (1, TB)
            # One EUP log per element, VPU multiply, cheap sublane reduce.
            return jnp.sum(e1 * jnp.log(x), axis=0, keepdims=True)

        def power1():
            return jnp.exp(log_power1())

        def linear1():
            # nn.Linear(D, 1): VPU multiply + sublane reduce (deliberately NOT MXU).
            return jnp.sum(w1 * x, axis=0, keepdims=True) + b1

        def layer1(idx):
            # idx == 0 -> power unit, else linear unit (static selection).
            return power1() if idx == 0 else linear1()

        # Static switch chain resolved at trace time; only the live path is emitted.
        if idx_h == 0:
            # out = power_activation3(input_to_power3)
            if idx_f == 0:
                # input_to_power3 = y3 = power_activation2(input_to_power2)
                if idx_c == 0:
                    # ((e^s1)^e2)^e3 = e^{(e2*e3)*s1}  — exact fold for x > 0.
                    out = jnp.exp((e2 * e3) * log_power1())
                else:
                    out = jnp.power(jnp.power(linear1(), e2), e3)
            else:
                # input_to_power3 = y4 = linear2(input_to_linear2)
                out = jnp.power(layer1(idx_d) * w2 + b2, e3)
        else:
            # out = linear3(input_to_linear3) = input_to_linear3 * w3 + b3
            if idx_g == 0:
                # input_to_linear3 = y3
                if idx_c == 0:
                    y3 = jnp.exp(e2 * log_power1())
                else:
                    y3 = jnp.power(linear1(), e2)
            else:
                # input_to_linear3 = y4
                y3 = layer1(idx_d) * w2 + b2
            out = y3 * w3 + b3

        out_ref[...] = out

    return kernel


def sparse_composed_forward(x, params, switches, *, max_block_b=8192):
    """x: (B, D) f32, x > 0. params: dict of arrays. switches: dict of static ints.
    Returns (B, 1) f32, matching the PyTorch module's forward."""
    B, D = x.shape

    # --- layout: batch -> lanes ---------------------------------------------------
    xt = jnp.transpose(x).astype(jnp.float32)  # (D, B)

    # Batch (lane) tile: multiple of 128, capped so a double-buffered (D, TB) f32 x
    # block stays around ~4 MiB (well under the 64 MiB v7x VMEM even with headroom).
    tb = _round_up(min(B, max_block_b), 128)
    bytes_per_lane_col = 4 * max(D, 1)                       # one lane column of x (f32)
    max_tb_by_vmem = max(128, ((4 * 1024 * 1024) // bytes_per_lane_col) // 128 * 128)
    tb = min(tb, max_tb_by_vmem)
    Bp = _round_up(B, tb)
    if Bp != B:
        # Pad with 1.0: log(1) = 0, everything stays finite; padded lanes are discarded.
        xt = jnp.pad(xt, ((0, 0), (0, Bp - B)), constant_values=1.0)

    e1 = params["e1"].reshape(D, 1).astype(jnp.float32)
    w1 = params["w1"].reshape(D, 1).astype(jnp.float32)
    scal = jnp.stack(
        [params["b1"], params["e2"], params["w2"], params["b2"],
         params["e3"], params["w3"], params["b3"]]
    ).astype(jnp.float32)  # (7,)

    kernel = make_kernel(
        switches["idx_c"], switches["idx_d"], switches["idx_f"],
        switches["idx_g"], switches["idx_h"],
    )

    grid = (Bp // tb,)

    cost = pl.CostEstimate(
        flops=int(4 * Bp * D + 8 * Bp),
        transcendentals=int(Bp * D + 2 * Bp),
        bytes_accessed=int(4 * (D * Bp + Bp + 2 * D + 8)),
    )

    out = pl.pallas_call(
        kernel,
        out_shape=jax.ShapeDtypeStruct((1, Bp), jnp.float32),
        grid=grid,
        in_specs=[
            # x: batch-tiled, double-buffered pipeline over the grid.
            pl.BlockSpec((D, tb), lambda i: (0, i)),
            # e1 / w1: tiny constants, whole-array resident in VMEM (no per-step DMA).
            pl.BlockSpec(memory_space=pltpu.MemorySpace.VMEM),
            pl.BlockSpec(memory_space=pltpu.MemorySpace.VMEM),
            # 7 scalar params in SMEM.
            pl.BlockSpec(memory_space=pltpu.MemorySpace.SMEM),
        ],
        out_specs=pl.BlockSpec((1, tb), lambda i: (0, i)),
        compiler_params=pltpu.CompilerParams(
            dimension_semantics=("parallel",),  # shard batch tiles across TCs on v7x
        ),
        cost_estimate=cost,
    )(xt, e1, w1, scal)

    # (1, Bp) -> (B, 1); same element order, cheap reshape outside the kernel.
    return out[:, :B].reshape(B, 1)


def reference_forward(x, params, switches):
    """Pure-JAX reference mirroring the PyTorch forward (original prod-of-powers form)."""
    e1 = params["e1"].reshape(1, -1)
    w1 = params["w1"].reshape(1, -1)
    power_out1 = jnp.prod(jnp.power(x, e1), axis=1, keepdims=True)
    linear_out1 = jnp.sum(x * w1, axis=1, keepdims=True) + params["b1"]
    input_to_power2 = power_out1 if switches["idx_c"] == 0 else linear_out1
    input_to_linear2 = power_out1 if switches["idx_d"] == 0 else linear_out1
    y3 = jnp.power(input_to_power2, params["e2"])
    y4 = input_to_linear2 * params["w2"] + params["b2"]
    input_to_power3 = y3 if switches["idx_f"] == 0 else y4
    input_to_linear3 = y3 if switches["idx_g"] == 0 else y4
    y5 = jnp.power(input_to_power3, params["e3"])
    y6 = input_to_linear3 * params["w3"] + params["b3"]
    return y5 if switches["idx_h"] == 0 else y6


if __name__ == "__main__":
    key = jax.random.PRNGKey(0)
    B, D = 8, 4  # batch, input_dim

    k = jax.random.split(key, 10)
    # Inputs kept positive so fractional powers (and the log-sum-exp rewrite) are well-defined.
    x = jax.random.uniform(k[0], (B, D), jnp.float32, minval=0.5, maxval=1.5)

    params = {
        "e1": jax.random.uniform(k[1], (D,), jnp.float32),   # PowerActivation(input_dim) exponents
        "w1": jax.random.uniform(k[2], (D,), jnp.float32),   # nn.Linear(D,1).weight ~ U[0,1]
        "b1": jax.random.uniform(k[3], (), jnp.float32),     # nn.Linear(D,1).bias   ~ U[0,1]
        "e2": jax.random.uniform(k[4], (), jnp.float32),
        "w2": jax.random.uniform(k[5], (), jnp.float32),
        "b2": jax.random.uniform(k[6], (), jnp.float32),
        "e3": jax.random.uniform(k[7], (), jnp.float32),
        "w3": jax.random.uniform(k[8], (), jnp.float32),
        "b3": jax.random.uniform(k[9], (), jnp.float32),
    }

    # Exercise several static switch combinations, including the fully power-composed
    # chain (trace-time exponent folding) and linear-heavy paths.
    switch_cases = [
        {"idx_c": 0, "idx_d": 1, "idx_f": 0, "idx_g": 1, "idx_h": 1},
        {"idx_c": 0, "idx_d": 0, "idx_f": 0, "idx_g": 0, "idx_h": 0},
        {"idx_c": 1, "idx_d": 0, "idx_f": 1, "idx_g": 0, "idx_h": 1},
    ]

    for switches in switch_cases:
        out = sparse_composed_forward(x, params, switches)
        out = jax.block_until_ready(out)
        ref = reference_forward(x, params, switches)
        assert out.shape == (B, 1)
        assert jnp.allclose(out, ref, rtol=1e-3, atol=1e-3), (switches, out, ref)

    print("KERNEL_OK")
</pallas_src>

<mosaic_0001>
module attributes {stable_mosaic.version = 11 : i64} {
  func.func @kernel(%arg0: i32, %arg1: memref<4x128xf32, #tpu.memory_space<vmem>>, %arg2: memref<4x1xf32, #tpu.memory_space<vmem>>, %arg3: memref<4x1xf32, #tpu.memory_space<vmem>>, %arg4: memref<7xf32, #tpu.memory_space<smem>>, %arg5: memref<1x128xf32, #tpu.memory_space<vmem>>) attributes {dimension_semantics = [#tpu.dimension_semantics<parallel>], iteration_bounds = array<i64: 1>, scalar_prefetch = 0 : i64, scratch_operands = 0 : i64, tpu.core_type = #tpu.core_type<tc>, window_params = [{transform_indices = @transform_0, window_bounds = array<i64: 4, 128>}, {pipeline_mode = #tpu.pipeline_mode<synchronous>, transform_indices = @transform_1, window_bounds = array<i64: 4, 1>}, {pipeline_mode = #tpu.pipeline_mode<synchronous>, transform_indices = @transform_2, window_bounds = array<i64: 4, 1>}, {transform_indices = @transform_3, window_bounds = array<i64: 7>}, {transform_indices = @transform_4, window_bounds = array<i64: 1, 128>}]} {
    %c0 = arith.constant 0 : index
    %c0_0 = arith.constant 0 : index
    %0 = vector.load %arg1[%c0, %c0_0] : memref<4x128xf32, #tpu.memory_space<vmem>>, vector<4x128xf32>
    %c0_1 = arith.constant 0 : index
    %c0_2 = arith.constant 0 : index
    %1 = vector.load %arg3[%c0_1, %c0_2] : memref<4x1xf32, #tpu.memory_space<vmem>>, vector<4x1xf32>
    %c0_3 = arith.constant 0 : index
    %2 = memref.load %arg4[%c0_3] : memref<7xf32, #tpu.memory_space<smem>>
    %c2 = arith.constant 2 : index
    %3 = memref.load %arg4[%c2] : memref<7xf32, #tpu.memory_space<smem>>
    %c3 = arith.constant 3 : index
    %4 = memref.load %arg4[%c3] : memref<7xf32, #tpu.memory_space<smem>>
    %c5 = arith.constant 5 : index
    %5 = memref.load %arg4[%c5] : memref<7xf32, #tpu.memory_space<smem>>
    %c6 = arith.constant 6 : index
    %6 = memref.load %arg4[%c6] : memref<7xf32, #tpu.memory_space<smem>>
    %7 = vector.broadcast %1 : vector<4x1xf32> to vector<4x128xf32>
    %8 = arith.mulf %7, %0 : vector<4x128xf32>
    %cst = arith.constant dense<0.000000e+00> : vector<128xf32>
    %9 = vector.multi_reduction <add>, %8, %cst [0] : vector<4x128xf32> to vector<128xf32>
    %10 = vector.shape_cast %9 : vector<128xf32> to vector<1x128xf32>
    %11 = vector.broadcast %2 : f32 to vector<1x128xf32>
    %12 = arith.addf %10, %11 : vector<1x128xf32>
    %13 = vector.broadcast %3 : f32 to vector<1x128xf32>
    %14 = arith.mulf %12, %13 : vector<1x128xf32>
    %15 = vector.broadcast %4 : f32 to vector<1x128xf32>
    %16 = arith.addf %14, %15 : vector<1x128xf32>
    %17 = vector.broadcast %5 : f32 to vector<1x128xf32>
    %18 = arith.mulf %16, %17 : vector<1x128xf32>
    %19 = vector.broadcast %6 : f32 to vector<1x128xf32>
    %20 = arith.addf %18, %19 : vector<1x128xf32>
    %c0_4 = arith.constant 0 : index
    %c0_5 = arith.constant 0 : index
    %21 = vector.load %arg5[%c0_4, %c0_5] : memref<1x128xf32, #tpu.memory_space<vmem>>, vector<1x128xf32>
    tpu.vector_store %arg5[%c0_4, %c0_5], %20 {strides = array<i32>} : memref<1x128xf32, #tpu.memory_space<vmem>>, vector<1x128xf32>,
    return
  }
  func.func @transform_0(%arg0: i32) -> (i32, i32) {
    %c0_i32 = arith.constant 0 : i32
    %c0_i32_0 = arith.constant 0 : i32
    return %c0_i32, %arg0 : i32, i32
  }
  func.func @transform_1(%arg0: i32) -> (i32, i32) {
    %c0_i32 = arith.constant 0 : i32
    %c0_i32_0 = arith.constant 0 : i32
    %c0_i32_1 = arith.constant 0 : i32
    return %c0_i32, %c0_i32_0 : i32, i32
  }
  func.func @transform_2(%arg0: i32) -> (i32, i32) {
    %c0_i32 = arith.constant 0 : i32
    %c0_i32_0 = arith.constant 0 : i32
    %c0_i32_1 = arith.constant 0 : i32
    return %c0_i32, %c0_i32_0 : i32, i32
  }
  func.func @transform_3(%arg0: i32) -> i32 {
    %c0_i32 = arith.constant 0 : i32
    %c0_i32_0 = arith.constant 0 : i32
    return %c0_i32 : i32
  }
  func.func @transform_4(%arg0: i32) -> (i32, i32) {
    %c0_i32 = arith.constant 0 : i32
    %c0_i32_0 = arith.constant 0 : i32
    return %c0_i32, %arg0 : i32, i32
  }
}

</mosaic_0001>

<bundles_post_ra>
// kernel: tpu_custom_call.1
= control target key start
LH: loop header
LB: loop body
LE: loop exit
PB: predicated region body
PF: predicated region fallthrough
CT: control target
= control target key end

     0   :  { %9 = vsyncpa [#allocation4], 0  ;;  %s173_s0 = inlined_call_operand.vmem [shape: f32[4,128], index: 0, kind: input, shape index: {}]   ;;  %s174_s1 = inlined_call_operand.vmem [shape: f32[4,1], index: 1, kind: input, shape index: {}]   ;;  %s175_s2 = inlined_call_operand.vmem [shape: f32[4,1], index: 2, kind: input, shape index: {}]   ;;  %s176_s3 = inlined_call_operand.vmem [shape: f32[7], index: 3, kind: input, shape index: {}]   ;;  %s177_s4 = inlined_call_operand.hbm [shape: f32[1,128], index: 4, kind: output, shape index: {}]  }
   0x1   :  { %10 = vsyncpa [#allocation3], 0  ;;  %s23_s17 = sshll.u32 %s176_s3, 4  ;;  %s24_s17 = int_to_ptr.vmem [resolvable:$true] %s23_s17 }
   0x2   :  { %s86_s18 = scalar_lea.vmem %s24_s17, 16  ;;  %p91_p1 = scmp.lt.s32.totalorder %s24_s17, %s24_s17 }
   0x3   :  { %p87_p0 = scmp.ne.s32.totalorder %s24_s17, %s86_s18  ;;  %p92_p2 = scmp.lt.s32.totalorder %s86_s18, %s86_s18 }
   0x5   :  { %p93_p3 = por %p92_p2, %p91_p1 }
   0x7   :  { %p94_p4 = pnand %p93_p3, %p87_p0 }
   0x9   :  { %97 = shalt.err (!%p94_p4)
}
   0xa   :  { %s124_s1 = smov [#allocation2]  }
   0xb   :  { %26 = dma.vmem_to_smem %s24_s17, 16, %s124_s1, [#allocation4]  }
   0xc   :  { %120 = dma.done.wait [#allocation4], 16  }
   0xd   :  { %121 = vsyncadd [#allocation4], 4294967280 }
   0xe   :  { %30 = sfence }
   0xf   :  { %v32_v0 = vld [vmem:[%s175_s2] sm:$0xf]  ;;  %v125_v1 = vmov 0   ;;  %vm44_vm0 = vcmask 1043456   ;;  %s33_s22 = sld [smem:[#allocation2]]  ;;  %s78_s23 = sld [smem:[#allocation2 + $0x2]] }
  0x10   :  { %85 = vset.pattern.permute.xlu0 %v125_v1  ;;  %v31_v2 = vld [vmem:[%s173_s0] sm:$0xf]  ;;  %s79_s24 = sld [smem:[#allocation2 + $0x3]]  ;;  %s80_s25 = sld [smem:[#allocation2 + $0x5]] }
  0x11   :  { %40 = vperm.xlu0 %85, %v32_v0   ;;  %s81_s2 = sld [smem:[#allocation2 + $0x6]]  ;;  %s126_s0 = smov [#allocation5]  }
  0x12   :  { %s69_s26 = sshll.u32 %s126_s0, 4  ;;  %s70_s26 = int_to_ptr.vmem [resolvable:$true] %s69_s26 }
  0x13   :  { %s98_s27 = scalar_lea.vmem %s70_s26, 16  ;;  %s102_s28 = scalar_lea.vmem %s70_s26, 32 }
  0x14   :  { %p99_p5 = scmp.ne.s32.totalorder %s70_s26, %s98_s27  ;;  %p103_p6 = scmp.lt.s32.totalorder %s70_s26, %s70_s26 }
  0x15   :  { %v52_v11 = vstv %s33_s22  ;;  %v54_v13 = vstv %s78_s23  ;;  %p104_p7 = scmp.lt.s32.totalorder %s102_s28, %s98_s27 }
  0x16   :  { %v56_v15 = vstv %s79_s24  ;;  %v58_v17 = vstv %s80_s25 }
  0x17   :  { %v60_v19 = vstv %s81_s2  ;;  %p105_p8 = por %p104_p7, %p103_p6 }
  0x19   :  { %p106_p9 = pnand %p105_p8, %p99_p5 }
  0x90   :  { %v41_v3 = vpop.permute.xlu0 %40 }
  0x91   :  { %v43_v4 = vmul.f32 %v41_v3, %v31_v2 }
  0x93   :  { %v45_v5 = vsel %vm44_vm0, %v43_v4, 0.0 }
  0x94   :  { %v46_v6 = vrot.slane %v45_v5, 4 }
  0x96   :  { %v47_v7 = vadd.f32 %v46_v6, %v45_v5 }
  0x98   :  { %v48_v8 = vrot.slane %v47_v7, 2 }
  0x9a   :  { %v49_v9 = vadd.f32 %v48_v8, %v47_v7 }
  0x9c   :  { %v50_v10 = vrot.slane %v49_v9, 1 }
  0x9e   :  { %v51_v12 = vadd.f32 %v50_v10, %v49_v9 }
  0xa0   :  { %v53_v14 = vadd.f32 %v52_v11, %v51_v12 }
  0xa2   :  { %v55_v16 = vmul.f32 %v54_v13, %v53_v14 }
  0xa4   :  { %v57_v18 = vadd.f32 %v56_v15, %v55_v16 }
  0xa6   :  { %v59_v20 = vmul.f32 %v58_v17, %v57_v18 }
  0xa8   :  { %v61_v21 = vadd.f32 %v60_v19, %v59_v20 }
  0xaa   :  { %62 = vst [vmem:[#allocation5] sm:$0x1] %v61_v21 }
  0xab   :  { %109 = shalt.err (!%p106_p9)
}
  0xac   :  { %s110_s5 = scalar_lea.hbm %s177_s4, 16 }
  0xad   :  { %p111_p10 = scmp.ne.s32.totalorder %s177_s4, %s110_s5  ;;  %p114_p11 = scmp.lt.u32.totalorder %s110_s5, %s177_s4 }
  0xaf   :  { %p116_p12 = pnand %p114_p11, %p111_p10 }
  0xb1   :  { %119 = shalt.err (!%p116_p12)
}
  0xb2   :  { %72 = dma.vmem_to_hbm [thread:$0]  %s70_s26, 16, %s177_s4, [#allocation3]  }
  0xb3   :  { %122 = dma.done.wait [#allocation3], 16  }
  0xb4   :  { %123 = vsyncadd [#allocation3], 4294967280 }
  0xb5   :  { %76 = vsyncpa [#allocation3], 1 }
  0xb6   :  { %77 = vsyncpa [#allocation4], 1 }

</bundles_post_ra>
